<compile_context>
chip_gen: v7x
topology: tpu7x:2x2x1
jax: 0.10.0
libtpu: 0.0.40
codegen_flags: <defaults>
</compile_context>

<pallas_src>
import functools

import jax
import jax.numpy as jnp
from jax.experimental import pallas as pl
from jax.experimental.pallas import tpu as pltpu


def _round_up(x, m):
    return (x + m - 1) // m * m


@functools.lru_cache(maxsize=None)
def _vmem_limit_bytes():
    """Scoped-VMEM limit derived from physical capacity; conservative fallback."""
    cap = 64 * 1024 * 1024  # v7x per-core VMEM (smallest current generation)
    try:
        cap = int(getattr(pltpu.get_tpu_info(), "vmem_capacity_bytes", cap))
    except Exception:
        pass
    # ~48 MiB on v7x (64 MiB physical), capped at 96 MiB on v5e/v6e (128 MiB).
    return min((cap * 3) // 4, 96 * 1024 * 1024)


# ----------------------------------------------------------------------------
# Kernel 1: 1x1 conv (no bias) == tiled channel matmul
# ----------------------------------------------------------------------------
def _matmul_kernel(a_ref, b_ref, o_ref, acc_ref):
    @pl.when(pl.program_id(2) == 0)
    def _():
        acc_ref[...] = jnp.zeros_like(acc_ref)

    acc_ref[...] += jnp.dot(a_ref[...], b_ref[...],
                            preferred_element_type=jnp.float32)

    @pl.when(pl.program_id(2) == pl.num_programs(2) - 1)
    def _():
        o_ref[...] = acc_ref[...].astype(o_ref.dtype)


def matmul_tiled(a, b, *, tm=512, tn=512, tk=512):
    """a: (M, K) @ b: (K, N) -> (M, N)."""
    M, K = a.shape
    K2, N = b.shape
    assert K == K2
    itemsize = a.dtype.itemsize
    vmem_limit = _vmem_limit_bytes()
    budget = (vmem_limit * 3) // 4

    tm_ = M if M <= tm else tm
    tk_ = K if K <= tk else tk
    if K % tk_ != 0:
        # Rare for 1x1-conv channel counts; zero-padding K keeps the reduction
        # exact (M / N edge blocks are handled by cdiv grids with no pad copy).
        kp = _round_up(K, tk_)
        a = jnp.pad(a, ((0, 0), (0, kp - K)))
        b = jnp.pad(b, ((0, kp - K), (0, 0)))
        K = kp

    def vmem_est(tn_c):
        return (2 * tm_ * tk_ * itemsize      # A, double-buffered
                + 2 * tk_ * tn_c * itemsize   # B, double-buffered
                + 2 * tm_ * tn_c * itemsize   # out, double-buffered
                + tm_ * tn_c * 4)             # f32 accumulator

    # Widen N to the full output width when it fits: A then streams from HBM
    # exactly once instead of once per N tile.
    tn_ = N if (N <= tn or vmem_est(N) <= budget) else tn

    grid = (pl.cdiv(M, tm_), pl.cdiv(N, tn_), K // tk_)
    return pl.pallas_call(
        _matmul_kernel,
        out_shape=jax.ShapeDtypeStruct((M, N), a.dtype),
        grid=grid,
        in_specs=[
            pl.BlockSpec((tm_, tk_), lambda i, j, k: (i, k)),
            pl.BlockSpec((tk_, tn_), lambda i, j, k: (k, j)),
        ],
        out_specs=pl.BlockSpec((tm_, tn_), lambda i, j, k: (i, j)),
        scratch_shapes=[pltpu.VMEM((tm_, tn_), jnp.float32)],
        compiler_params=pltpu.CompilerParams(
            dimension_semantics=("parallel", "parallel", "arbitrary"),
            vmem_limit_bytes=vmem_limit),
    )(a, b)


def conv1x1_nhwc(x_nhwc, weight):
    """x_nhwc: (B, H, W, Cs); weight: (Ct, Cs, 1, 1) torch-style. Returns NHWC."""
    B, H, W, Cs = x_nhwc.shape
    Ct = weight.shape[0]
    w2d = weight.reshape(Ct, Cs).T                      # (Cs, Ct)
    out2d = matmul_tiled(x_nhwc.reshape(B * H * W, Cs), w2d)
    return out2d.reshape(B, H, W, Ct)


# ----------------------------------------------------------------------------
# Kernel 2: row-blocked per-patch Gram + normalize + squared-diff partial sums
# ----------------------------------------------------------------------------
def _row_normalize(g):
    # torch.nn.functional.normalize(g, dim=-1, eps=1e-12):
    # g / max(||row||, 1e-12) == g * rsqrt(max(||row||^2, 1e-24)).  EUP rsqrt.
    ss = jnp.sum(g * g, axis=-1, keepdims=True)
    return g * jax.lax.rsqrt(jnp.maximum(ss, 1e-24))


def _make_gram_kernel(c_tile, n_chunks):
    # Contract dim 1 (n) of both operands with batch dim 0 (patch): the MXU
    # takes a transposed LHS natively, so no swapaxes and no (pb, c_tile, n)
    # intermediate with n padded out to 128 lanes.
    dn = (((1,), (1,)), ((0,), (0,)))

    def kernel(fs_ref, ft_ref, out_ref):
        fs = fs_ref[...]                     # (pb, n, C), C lane-dense
        ft = ft_ref[...]

        def chunk_partial(lo):
            # Static, lane-aligned slice of the already-resident block -- no
            # second HBM stream for the Gram-row chunk.
            fs_c = fs if n_chunks == 1 else fs_ref[:, :, lo:lo + c_tile]
            ft_c = ft if n_chunks == 1 else ft_ref[:, :, lo:lo + c_tile]
            gs = jax.lax.dot_general(fs_c, fs, dn,
                                     preferred_element_type=jnp.float32)
            gt = jax.lax.dot_general(ft_c, ft, dn,
                                     preferred_element_type=jnp.float32)
            d = _row_normalize(gs) - _row_normalize(gt)   # (pb, c_tile, C)
            # Reduce only the patch-block axis here (pure VPU vreg adds); keep
            # (c_tile, C) lane-wise partials so the cross-lane reduce runs once.
            return jnp.sum(d * d, axis=0)

        acc = chunk_partial(0)
        for kk in range(1, n_chunks):
            acc = acc + chunk_partial(kk * c_tile)

        # One scalar reduce + broadcast per patch block, into a lane-dense tile.
        out_ref[...] = jnp.zeros_like(out_ref) + jnp.sum(acc)

    return kernel


def _pick_gram_tiles(P, n, C, itemsize, budget_bytes):
    """Choose (patch_block, c_tile) so live VMEM stays under the scoped budget."""
    if C <= 256:
        c_tile = C
    elif C % 256 == 0:
        c_tile = 256
    elif C % 128 == 0:
        c_tile = 128
    else:
        c_tile = C  # TODO(synk): pad C to a 128 multiple for odd channel counts.

    def est(pb_, ct_):
        # 2 inputs x 2 pipeline buffers of the (pb, n, C) block
        # + ~4 live (pb, ct, C) f32 intermediates (gs, gt, normalized, diff)
        # + the (ct, C) f32 lane-wise accumulator + the double-buffered out tile.
        return (4 * pb_ * n * C * itemsize
                + 4 * pb_ * ct_ * C * 4
                + ct_ * C * 4
                + 2 * 8 * 128 * 4)

    # Largest power-of-two patch block dividing P (cap 64: big DMAs / few grid
    # steps on v6e, but keep >= 2 blocks so v7x megacore gets both cores busy).
    pb = 64
    while pb > 1 and P % pb != 0:
        pb //= 2
    while pb > 1 and P // pb < 2:
        pb //= 2
    while pb > 1 and est(pb, c_tile) > budget_bytes:
        pb //= 2
    if c_tile > 128 and C % 128 == 0 and est(pb, c_tile) > budget_bytes:
        c_tile = 128
    return pb, c_tile


def ickd_gram_loss_sum(f_s, f_t):
    """f_s, f_t: (P, n, C) with C in the lane dim. Returns sum((G_s - G_t)^2)."""
    P, n, C = f_s.shape
    vmem_limit = _vmem_limit_bytes()
    pb, c_tile = _pick_gram_tiles(P, n, C, f_s.dtype.itemsize,
                                  budget_bytes=(vmem_limit * 3) // 4)
    assert P % pb == 0 and C % c_tile == 0
    n_chunks = C // c_tile

    out = pl.pallas_call(
        _make_gram_kernel(c_tile, n_chunks),
        out_shape=jax.ShapeDtypeStruct((P // pb, 8, 128), jnp.float32),
        grid=(P // pb,),
        in_specs=[
            pl.BlockSpec((pb, n, C), lambda i: (i, 0, 0)),   # fs: streamed once
            pl.BlockSpec((pb, n, C), lambda i: (i, 0, 0)),   # ft: streamed once
        ],
        out_specs=pl.BlockSpec((1, 8, 128), lambda i: (i, 0, 0)),
        compiler_params=pltpu.CompilerParams(
            dimension_semantics=("parallel",),
            vmem_limit_bytes=vmem_limit),
    )(f_s, f_t)
    return jnp.sum(out[:, 0, 0])


# ----------------------------------------------------------------------------
# Layout glue (reshapes/transposes only)
# ----------------------------------------------------------------------------
def nhwc_to_gram_layout(x_nhwc, bin_h, bin_w):
    """(B, H, W, C) -> (P, n, C), P = B*bin_h*bin_w, n = rH*rW.

    Reproduces PyTorch ICKD.patch_split exactly, including the torch .view()
    reinterpretation of each contiguous (rH, rW, C) patch as (C, rH*rW)
    (this intentionally scrambles channels/space -- do NOT "fix" it), then
    transposes so the large channel axis lands in the TPU lane dimension.
    """
    B, H, W, C = x_nhwc.shape
    rH, rW = H // bin_h, W // bin_w
    n = rH * rW
    x = x_nhwc.reshape(B, bin_h, rH, bin_w, rW, C)
    x = jnp.transpose(x, (0, 1, 3, 2, 4, 5))            # (B, bh, bw, rH, rW, C)
    x = x.reshape(B * bin_h * bin_w, C, n)              # torch .view reinterpret
    return jnp.transpose(x, (0, 2, 1))                  # (P, n, C): lane-dense C


class ICKDPallas:
    def __init__(self, s_channels, t_channels, key):
        self.bin_h = 8
        self.bin_w = 8
        self.s_channels = s_channels
        self.t_channels = t_channels
        # deterministic init mimicking nn.Conv2d default (uniform +/- 1/sqrt(fan_in))
        bound = 1.0 / (float(s_channels) ** 0.5)
        self.conv_weight = jax.random.uniform(
            key, (t_channels, s_channels, 1, 1), jnp.float32, -bound, bound)

    def __call__(self, s_feats, t_feats):
        bin_h, bin_w = self.bin_h, self.bin_w
        if s_feats.shape[2] == 45:
            bin_h = bin_w = 9
        # NCHW -> NHWC once; stay channels-last all the way to the Gram kernel.
        # Compute stays f32 to match the PyTorch reference bit-for-bit-ish;
        # a bf16 fast path (with f32 accumulation) would roughly double MXU
        # throughput but shifts numerics beyond the 1e-4 tolerance used below.
        s_nhwc = jnp.transpose(s_feats, (0, 2, 3, 1))
        t_nhwc = jnp.transpose(t_feats, (0, 2, 3, 1))
        if self.t_channels != self.s_channels:
            s_nhwc = conv1x1_nhwc(s_nhwc, self.conv_weight)
        f_s = nhwc_to_gram_layout(s_nhwc, bin_h, bin_w)
        f_t = nhwc_to_gram_layout(t_nhwc, bin_h, bin_w)
        P, _, C = f_s.shape
        loss_sum = ickd_gram_loss_sum(f_s, f_t)
        return loss_sum / jnp.float32(C * P)


# ----------------------------------------------------------------------------
# Pure-JAX reference (mirrors the PyTorch code) for sanity checking
# ----------------------------------------------------------------------------
def ickd_reference(module, s_feats, t_feats):
    bin_h = bin_w = 8
    if s_feats.shape[2] == 45:
        bin_h = bin_w = 9
    if module.t_channels != module.s_channels:
        w2d = module.conv_weight.reshape(module.t_channels, module.s_channels)
        s_feats = jnp.einsum("bchw,oc->bohw", s_feats, w2d)

    def patch_split(x):
        B, C, H, W = x.shape
        rH, rW = H // bin_h, W // bin_w
        out = x.reshape(B, C, bin_h, rH, bin_w, rW)
        out = jnp.transpose(out, (0, 2, 4, 3, 5, 1))     # (B, bh, bw, rH, rW, C)
        return out.reshape(B * bin_h * bin_w, C, rH * rW)  # torch .view reinterpret

    f_s = patch_split(s_feats)
    f_t = patch_split(t_feats)
    b, c = f_s.shape[0], f_s.shape[1]

    def gram_norm(f):
        g = jnp.einsum("bch,bkh->bck", f, f)
        nrm = jnp.maximum(jnp.sqrt(jnp.sum(g * g, axis=2, keepdims=True)), 1e-12)
        return g / nrm

    d = gram_norm(f_s) - gram_norm(f_t)
    return jnp.sum(d * d) / jnp.float32(c * b)


if __name__ == "__main__":
    key = jax.random.PRNGKey(0)
    k_w, k_s, k_t = jax.random.split(key, 3)

    B, Cs, Ct, H, W = 2, 4, 8, 16, 16  # H, W divisible by bin_h = bin_w = 8
    s_feats = jax.random.normal(k_s, (B, Cs, H, W), jnp.float32)
    t_feats = jax.random.normal(k_t, (B, Ct, H, W), jnp.float32)

    module = ICKDPallas(Cs, Ct, k_w)

    loss = jax.block_until_ready(module(s_feats, t_feats))
    ref = jax.block_until_ready(ickd_reference(module, s_feats, t_feats))
    assert jnp.allclose(loss, ref, rtol=1e-4, atol=1e-5), (loss, ref)

    print("KERNEL_OK")
</pallas_src>

<mosaic_0001>
module attributes {stable_mosaic.version = 11 : i64} {
  func.func @_matmul_kernel(%arg0: i32, %arg1: i32, %arg2: i32, %arg3: memref<512x4xf32, #tpu.memory_space<vmem>>, %arg4: memref<4x8xf32, #tpu.memory_space<vmem>>, %arg5: memref<512x8xf32, #tpu.memory_space<vmem>>, %arg6: memref<512x8xf32, #tpu.memory_space<vmem>>) attributes {dimension_semantics = [#tpu.dimension_semantics<parallel>, #tpu.dimension_semantics<parallel>, #tpu.dimension_semantics<arbitrary>], iteration_bounds = array<i64: 1, 1, 1>, scalar_prefetch = 0 : i64, scratch_operands = 1 : i64, tpu.core_type = #tpu.core_type<tc>, window_params = [{transform_indices = @transform_0, window_bounds = array<i64: 512, 4>}, {transform_indices = @transform_1, window_bounds = array<i64: 4, 8>}, {transform_indices = @transform_2, window_bounds = array<i64: 512, 8>}]} {
    %c0_i32 = arith.constant 0 : i32
    %0 = arith.cmpi eq, %arg2, %c0_i32 : i32
    %1 = arith.extui %0 : i1 to i32
    %c0_i32_0 = arith.constant 0 : i32
    %2 = arith.cmpi ne, %1, %c0_i32_0 : i32
    scf.if %2 {
      %cst_10 = arith.constant 0.000000e+00 : f32
      %12 = vector.broadcast %cst_10 : f32 to vector<512x8xf32>
      %c0_11 = arith.constant 0 : index
      %c0_12 = arith.constant 0 : index
      %13 = vector.load %arg6[%c0_11, %c0_12] : memref<512x8xf32, #tpu.memory_space<vmem>>, vector<512x8xf32>
      tpu.vector_store %arg6[%c0_11, %c0_12], %12 {strides = array<i32>} : memref<512x8xf32, #tpu.memory_space<vmem>>, vector<512x8xf32>,
    } else {
    }
    %c0 = arith.constant 0 : index
    %c0_1 = arith.constant 0 : index
    %3 = vector.load %arg6[%c0, %c0_1] : memref<512x8xf32, #tpu.memory_space<vmem>>, vector<512x8xf32>
    %c0_2 = arith.constant 0 : index
    %c0_3 = arith.constant 0 : index
    %4 = vector.load %arg3[%c0_2, %c0_3] : memref<512x4xf32, #tpu.memory_space<vmem>>, vector<512x4xf32>
    %c0_4 = arith.constant 0 : index
    %c0_5 = arith.constant 0 : index
    %5 = vector.load %arg4[%c0_4, %c0_5] : memref<4x8xf32, #tpu.memory_space<vmem>>, vector<4x8xf32>
    %cst = arith.constant dense<0.000000e+00> : vector<512x8xf32>
    %6 = tpu.matmul %4, %5, %cst {dimension_numbers = #tpu.dot_dimension_numbers<[1], [0], [0], [1], [0, 0, 1, 1], [], []>} : vector<512x4xf32>, vector<4x8xf32>, vector<512x8xf32> -> vector<512x8xf32>
    %7 = arith.addf %3, %6 : vector<512x8xf32>
    %c0_6 = arith.constant 0 : index
    %c0_7 = arith.constant 0 : index
    %8 = vector.load %arg6[%c0_6, %c0_7] : memref<512x8xf32, #tpu.memory_space<vmem>>, vector<512x8xf32>
    tpu.vector_store %arg6[%c0_6, %c0_7], %7 {strides = array<i32>} : memref<512x8xf32, #tpu.memory_space<vmem>>, vector<512x8xf32>,
    %c0_i32_8 = arith.constant 0 : i32
    %9 = arith.cmpi eq, %arg2, %c0_i32_8 : i32
    %10 = arith.extui %9 : i1 to i32
    %c0_i32_9 = arith.constant 0 : i32
    %11 = arith.cmpi ne, %10, %c0_i32_9 : i32
    scf.if %11 {
      %c0_10 = arith.constant 0 : index
      %c0_11 = arith.constant 0 : index
      %12 = vector.load %arg6[%c0_10, %c0_11] : memref<512x8xf32, #tpu.memory_space<vmem>>, vector<512x8xf32>
      %c0_12 = arith.constant 0 : index
      %c0_13 = arith.constant 0 : index
      %13 = vector.load %arg5[%c0_12, %c0_13] : memref<512x8xf32, #tpu.memory_space<vmem>>, vector<512x8xf32>
      tpu.vector_store %arg5[%c0_12, %c0_13], %12 {strides = array<i32>} : memref<512x8xf32, #tpu.memory_space<vmem>>, vector<512x8xf32>,
    } else {
    }
    return
  }
  func.func @transform_0(%arg0: i32, %arg1: i32, %arg2: i32) -> (i32, i32) {
    %c0_i32 = arith.constant 0 : i32
    return %arg0, %arg2 : i32, i32
  }
  func.func @transform_1(%arg0: i32, %arg1: i32, %arg2: i32) -> (i32, i32) {
    %c0_i32 = arith.constant 0 : i32
    return %arg2, %arg1 : i32, i32
  }
  func.func @transform_2(%arg0: i32, %arg1: i32, %arg2: i32) -> (i32, i32) {
    %c0_i32 = arith.constant 0 : i32
    return %arg0, %arg1 : i32, i32
  }
}

</mosaic_0001>

<bundles_post_ra>
// kernel: tpu_custom_call.1
= control target key start
LH: loop header
LB: loop body
LE: loop exit
PB: predicated region body
PF: predicated region fallthrough
CT: control target
= control target key end

     0   :  { %vm402_vm0 = vcmask 1043456   ;;  %vm15_vm1 = vcmask 64512   ;;  %vm209_vm2 = vcmask 31744   ;;  %v1286_v3 = vmov 0.0   ;;  %s2025_s1 = inlined_call_operand.vmem [shape: f32[4,8], index: 1, kind: input, shape index: {}]   ;;  %s2026_s0 = inlined_call_operand.vmem [shape: f32[512,4], index: 0, kind: input, shape index: {}]   ;;  %s2027_s2 = inlined_call_operand.vmem [shape: f32[512,8], index: 2, kind: output, shape index: {}]  }
   0x1   :  { %v1305_v0 = vld [vmem:[%s2025_s1] sm:$0xf]  ;;  %17 = vst.msk [vmem:[#allocation2 + $0x8] sm:$0xff] %vm15_vm1, %v1286_v3  ;;  %16 = vst.msk [vmem:[#allocation2] sm:$0xff] %vm15_vm1, %v1286_v3  ;;  %v145_v4 = vld [vmem:[%s2026_s0 + $0x8] sm:$0xff] }
   0x2   :  { %v1310_v1 = vld [vmem:[%s2026_s0] sm:$0xff]  ;;  %18 = vst.msk [vmem:[#allocation2 + $0x10] sm:$0xff] %vm15_vm1, %v1286_v3  ;;  %19 = vst.msk [vmem:[#allocation2 + $0x18] sm:$0xff] %vm15_vm1, %v1286_v3  ;;  %1185 = vmatprep.subr.msk.mxu0 %vm402_vm0, %v1305_v0  ;;  %1283 = vmatprep.subr.msk.mxu1 %vm402_vm0, %v1305_v0  ;;  %v177_v5 = vld [vmem:[%s2026_s0 + $0x108] sm:$0xff] }
   0x3   :  { %v1315_v2 = vld [vmem:[%s2026_s0 + $0x100] sm:$0xff]  ;;  %20 = vst.msk [vmem:[#allocation2 + $0x20] sm:$0xff] %vm15_vm1, %v1286_v3  ;;  %21 = vst.msk [vmem:[#allocation2 + $0x28] sm:$0xff] %vm15_vm1, %v1286_v3  ;;  %1186 = vmatpush3.msk.msra.mxu0 %vm402_vm0, %v1305_v0  ;;  %1284 = vmatpush3.msk.msra.mxu1 %vm402_vm0, %v1305_v0  ;;  %v146_v6 = vld [vmem:[%s2026_s0 + $0x10] sm:$0xff] }
   0x4   :  { %22 = vst.msk [vmem:[#allocation2 + $0x30] sm:$0xff] %vm15_vm1, %v1286_v3  ;;  %23 = vst.msk [vmem:[#allocation2 + $0x38] sm:$0xff] %vm15_vm1, %v1286_v3  ;;  %v178_v7 = vld [vmem:[%s2026_s0 + $0x110] sm:$0xff]  ;;  %1187 = vmatprep.mubr.msk.f32.mxu0 %vm209_vm2, %v1310_v1  ;;  %1235 = vmatprep.mubr.msk.f32.mxu1 %vm209_vm2, %v1315_v2  ;;  %v147_v8 = vld [vmem:[%s2026_s0 + $0x18] sm:$0xff] }
   0x5   :  { %24 = vst.msk [vmem:[#allocation2 + $0x40] sm:$0xff] %vm15_vm1, %v1286_v3  ;;  %25 = vst.msk [vmem:[#allocation2 + $0x48] sm:$0xff] %vm15_vm1, %v1286_v3  ;;  %1188 = vmatmul.mubr.msk.f32.vlgmr.msra.gmra.mrb[0].mxu0 %vm209_vm2, %v145_v4  ;;  %1236 = vmatmul.mubr.msk.f32.vlgmr.msra.gmra.mrb[0].mxu1 %vm209_vm2, %v177_v5  ;;  %v179_v9 = vld [vmem:[%s2026_s0 + $0x118] sm:$0xff]  ;;  %v148_v10 = vld [vmem:[%s2026_s0 + $0x20] sm:$0xff] }
   0x6   :  { %26 = vst.msk [vmem:[#allocation2 + $0x50] sm:$0xff] %vm15_vm1, %v1286_v3  ;;  %27 = vst.msk [vmem:[#allocation2 + $0x58] sm:$0xff] %vm15_vm1, %v1286_v3  ;;  %1190 = vmatprep.mubr.msk.f32.mxu0 %vm209_vm2, %v146_v6  ;;  %1238 = vmatprep.mubr.msk.f32.mxu1 %vm209_vm2, %v178_v7  ;;  %v180_v11 = vld [vmem:[%s2026_s0 + $0x120] sm:$0xff]  ;;  %v149_v12 = vld [vmem:[%s2026_s0 + $0x28] sm:$0xff] }
   0x7   :  { %28 = vst.msk [vmem:[#allocation2 + $0x60] sm:$0xff] %vm15_vm1, %v1286_v3  ;;  %29 = vst.msk [vmem:[#allocation2 + $0x68] sm:$0xff] %vm15_vm1, %v1286_v3  ;;  %v181_v13 = vld [vmem:[%s2026_s0 + $0x128] sm:$0xff]  ;;  %v150_v14 = vld [vmem:[%s2026_s0 + $0x30] sm:$0xff] }
   0x8   :  { %30 = vst.msk [vmem:[#allocation2 + $0x70] sm:$0xff] %vm15_vm1, %v1286_v3  ;;  %31 = vst.msk [vmem:[#allocation2 + $0x78] sm:$0xff] %vm15_vm1, %v1286_v3  ;;  %v182_v15 = vld [vmem:[%s2026_s0 + $0x130] sm:$0xff]  ;;  %v151_v16 = vld [vmem:[%s2026_s0 + $0x38] sm:$0xff] }
   0x9   :  { %32 = vst.msk [vmem:[#allocation2 + $0x80] sm:$0xff] %vm15_vm1, %v1286_v3  ;;  %33 = vst.msk [vmem:[#allocation2 + $0x88] sm:$0xff] %vm15_vm1, %v1286_v3  ;;  %1191 = vmatmul.mubr.msk.f32.gmra.mrb[2].mxu0 %vm209_vm2, %v147_v8  ;;  %1239 = vmatmul.mubr.msk.f32.gmra.mrb[2].mxu1 %vm209_vm2, %v179_v9  ;;  %v183_v17 = vld [vmem:[%s2026_s0 + $0x138] sm:$0xff]  ;;  %v152_v18 = vld [vmem:[%s2026_s0 + $0x40] sm:$0xff] }
   0xa   :  { %34 = vst.msk [vmem:[#allocation2 + $0x90] sm:$0xff] %vm15_vm1, %v1286_v3  ;;  %35 = vst.msk [vmem:[#allocation2 + $0x98] sm:$0xff] %vm15_vm1, %v1286_v3  ;;  %1193 = vmatprep.mubr.msk.f32.mxu0 %vm209_vm2, %v148_v10  ;;  %1241 = vmatprep.mubr.msk.f32.mxu1 %vm209_vm2, %v180_v11  ;;  %v184_v19 = vld [vmem:[%s2026_s0 + $0x140] sm:$0xff]  ;;  %v153_v20 = vld [vmem:[%s2026_s0 + $0x48] sm:$0xff] }
   0xb   :  { %36 = vst.msk [vmem:[#allocation2 + $0xa0] sm:$0xff] %vm15_vm1, %v1286_v3  ;;  %37 = vst.msk [vmem:[#allocation2 + $0xa8] sm:$0xff] %vm15_vm1, %v1286_v3  ;;  %v185_v21 = vld [vmem:[%s2026_s0 + $0x148] sm:$0xff]  ;;  %v154_v22 = vld [vmem:[%s2026_s0 + $0x50] sm:$0xff] }
   0xc   :  { %38 = vst.msk [vmem:[#allocation2 + $0xb0] sm:$0xff] %vm15_vm1, %v1286_v3  ;;  %39 = vst.msk [vmem:[#allocation2 + $0xb8] sm:$0xff] %vm15_vm1, %v1286_v3  ;;  %v186_v23 = vld [vmem:[%s2026_s0 + $0x150] sm:$0xff]  ;;  %v155_v24 = vld [vmem:[%s2026_s0 + $0x58] sm:$0xff] }
   0xd   :  { %40 = vst.msk [vmem:[#allocation2 + $0xc0] sm:$0xff] %vm15_vm1, %v1286_v3  ;;  %41 = vst.msk [vmem:[#allocation2 + $0xc8] sm:$0xff] %vm15_vm1, %v1286_v3  ;;  %1194 = vmatmul.mubr.msk.f32.gmra.mrb[4].mxu0 %vm209_vm2, %v149_v12  ;;  %1242 = vmatmul.mubr.msk.f32.gmra.mrb[4].mxu1 %vm209_vm2, %v181_v13  ;;  %v187_v25 = vld [vmem:[%s2026_s0 + $0x158] sm:$0xff]  ;;  %v156_v26 = vld [vmem:[%s2026_s0 + $0x60] sm:$0xff] }
   0xe   :  { %42 = vst.msk [vmem:[#allocation2 + $0xd0] sm:$0xff] %vm15_vm1, %v1286_v3  ;;  %43 = vst.msk [vmem:[#allocation2 + $0xd8] sm:$0xff] %vm15_vm1, %v1286_v3  ;;  %1196 = vmatprep.mubr.msk.f32.mxu0 %vm209_vm2, %v150_v14  ;;  %1244 = vmatprep.mubr.msk.f32.mxu1 %vm209_vm2, %v182_v15  ;;  %v188_v27 = vld [vmem:[%s2026_s0 + $0x160] sm:$0xff]  ;;  %v157_v28 = vld [vmem:[%s2026_s0 + $0x68] sm:$0xff] }
   0xf   :  { %44 = vst.msk [vmem:[#allocation2 + $0xe0] sm:$0xff] %vm15_vm1, %v1286_v3  ;;  %45 = vst.msk [vmem:[#allocation2 + $0xe8] sm:$0xff] %vm15_vm1, %v1286_v3  ;;  %v189_v29 = vld [vmem:[%s2026_s0 + $0x168] sm:$0xff]  ;;  %v158_v30 = vld [vmem:[%s2026_s0 + $0x70] sm:$0xff] }
  0x10   :  { %46 = vst.msk [vmem:[#allocation2 + $0xf0] sm:$0xff] %vm15_vm1, %v1286_v3  ;;  %47 = vst.msk [vmem:[#allocation2 + $0xf8] sm:$0xff] %vm15_vm1, %v1286_v3  ;;  %v190_v31 = vld [vmem:[%s2026_s0 + $0x170] sm:$0xff]  ;;  %v159_v32 = vld [vmem:[%s2026_s0 + $0x78] sm:$0xff] }
  0x11   :  { %48 = vst.msk [vmem:[#allocation2 + $0x100] sm:$0xff] %vm15_vm1, %v1286_v3  ;;  %49 = vst.msk [vmem:[#allocation2 + $0x108] sm:$0xff] %vm15_vm1, %v1286_v3  ;;  %1197 = vmatmul.mubr.msk.f32.gmra.mrb[6].mxu0 %vm209_vm2, %v151_v16  ;;  %1245 = vmatmul.mubr.msk.f32.gmra.mrb[6].mxu1 %vm209_vm2, %v183_v17  ;;  %v191_v33 = vld [vmem:[%s2026_s0 + $0x178] sm:$0xff]  ;;  %v160_v34 = vld [vmem:[%s2026_s0 + $0x80] sm:$0xff] }
  0x12   :  { %50 = vst.msk [vmem:[#allocation2 + $0x110] sm:$0xff] %vm15_vm1, %v1286_v3  ;;  %51 = vst.msk [vmem:[#allocation2 + $0x118] sm:$0xff] %vm15_vm1, %v1286_v3  ;;  %1199 = vmatprep.mubr.msk.f32.mxu0 %vm209_vm2, %v152_v18  ;;  %1247 = vmatprep.mubr.msk.f32.mxu1 %vm209_vm2, %v184_v19  ;;  %v192_v35 = vld [vmem:[%s2026_s0 + $0x180] sm:$0xff]  ;;  %v161_v36 = vld [vmem:[%s2026_s0 + $0x88] sm:$0xff] }
  0x13   :  { %52 = vst.msk [vmem:[#allocation2 + $0x120] sm:$0xff] %vm15_vm1, %v1286_v3  ;;  %53 = vst.msk [vmem:[#allocation2 + $0x128] sm:$0xff] %vm15_vm1, %v1286_v3  ;;  %v193_v37 = vld [vmem:[%s2026_s0 + $0x188] sm:$0xff]  ;;  %v162_v38 = vld [vmem:[%s2026_s0 + $0x90] sm:$0xff] }
  0x14   :  { %54 = vst.msk [vmem:[#allocation2 + $0x130] sm:$0xff] %vm15_vm1, %v1286_v3  ;;  %55 = vst.msk [vmem:[#allocation2 + $0x138] sm:$0xff] %vm15_vm1, %v1286_v3  ;;  %v194_v39 = vld [vmem:[%s2026_s0 + $0x190] sm:$0xff]  ;;  %v163_v40 = vld [vmem:[%s2026_s0 + $0x98] sm:$0xff] }
  0x15   :  { %56 = vst.msk [vmem:[#allocation2 + $0x140] sm:$0xff] %vm15_vm1, %v1286_v3  ;;  %57 = vst.msk [vmem:[#allocation2 + $0x148] sm:$0xff] %vm15_vm1, %v1286_v3  ;;  %1200 = vmatmul.mubr.msk.f32.gmra.mrb[8].mxu0 %vm209_vm2, %v153_v20  ;;  %1248 = vmatmul.mubr.msk.f32.gmra.mrb[8].mxu1 %vm209_vm2, %v185_v21  ;;  %v195_v41 = vld [vmem:[%s2026_s0 + $0x198] sm:$0xff]  ;;  %v164_v42 = vld [vmem:[%s2026_s0 + $0xa0] sm:$0xff] }
  0x16   :  { %58 = vst.msk [vmem:[#allocation2 + $0x150] sm:$0xff] %vm15_vm1, %v1286_v3  ;;  %59 = vst.msk [vmem:[#allocation2 + $0x158] sm:$0xff] %vm15_vm1, %v1286_v3  ;;  %1202 = vmatprep.mubr.msk.f32.mxu0 %vm209_vm2, %v154_v22  ;;  %1250 = vmatprep.mubr.msk.f32.mxu1 %vm209_vm2, %v186_v23  ;;  %v196_v43 = vld [vmem:[%s2026_s0 + $0x1a0] sm:$0xff]  ;;  %v165_v44 = vld [vmem:[%s2026_s0 + $0xa8] sm:$0xff] }
  0x17   :  { %60 = vst.msk [vmem:[#allocation2 + $0x160] sm:$0xff] %vm15_vm1, %v1286_v3  ;;  %61 = vst.msk [vmem:[#allocation2 + $0x168] sm:$0xff] %vm15_vm1, %v1286_v3  ;;  %v197_v45 = vld [vmem:[%s2026_s0 + $0x1a8] sm:$0xff]  ;;  %v166_v46 = vld [vmem:[%s2026_s0 + $0xb0] sm:$0xff] }
  0x18   :  { %62 = vst.msk [vmem:[#allocation2 + $0x170] sm:$0xff] %vm15_vm1, %v1286_v3  ;;  %63 = vst.msk [vmem:[#allocation2 + $0x178] sm:$0xff] %vm15_vm1, %v1286_v3  ;;  %v198_v47 = vld [vmem:[%s2026_s0 + $0x1b0] sm:$0xff]  ;;  %v167_v48 = vld [vmem:[%s2026_s0 + $0xb8] sm:$0xff] }
  0x19   :  { %64 = vst.msk [vmem:[#allocation2 + $0x180] sm:$0xff] %vm15_vm1, %v1286_v3  ;;  %65 = vst.msk [vmem:[#allocation2 + $0x188] sm:$0xff] %vm15_vm1, %v1286_v3  ;;  %1203 = vmatmul.mubr.msk.f32.gmra.mrb[10].mxu0 %vm209_vm2, %v155_v24  ;;  %1251 = vmatmul.mubr.msk.f32.gmra.mrb[10].mxu1 %vm209_vm2, %v187_v25  ;;  %v199_v49 = vld [vmem:[%s2026_s0 + $0x1b8] sm:$0xff]  ;;  %v168_v50 = vld [vmem:[%s2026_s0 + $0xc0] sm:$0xff] }
  0x1a   :  { %66 = vst.msk [vmem:[#allocation2 + $0x190] sm:$0xff] %vm15_vm1, %v1286_v3  ;;  %67 = vst.msk [vmem:[#allocation2 + $0x198] sm:$0xff] %vm15_vm1, %v1286_v3  ;;  %1205 = vmatprep.mubr.msk.f32.mxu0 %vm209_vm2, %v156_v26  ;;  %1253 = vmatprep.mubr.msk.f32.mxu1 %vm209_vm2, %v188_v27  ;;  %v200_v51 = vld [vmem:[%s2026_s0 + $0x1c0] sm:$0xff]  ;;  %v169_v52 = vld [vmem:[%s2026_s0 + $0xc8] sm:$0xff] }
  0x1b   :  { %68 = vst.msk [vmem:[#allocation2 + $0x1a0] sm:$0xff] %vm15_vm1, %v1286_v3  ;;  %69 = vst.msk [vmem:[#allocation2 + $0x1a8] sm:$0xff] %vm15_vm1, %v1286_v3  ;;  %v201_v53 = vld [vmem:[%s2026_s0 + $0x1c8] sm:$0xff]  ;;  %v170_v54 = vld [vmem:[%s2026_s0 + $0xd0] sm:$0xff] }
  0x1c   :  { %70 = vst.msk [vmem:[#allocation2 + $0x1b0] sm:$0xff] %vm15_vm1, %v1286_v3  ;;  %71 = vst.msk [vmem:[#allocation2 + $0x1b8] sm:$0xff] %vm15_vm1, %v1286_v3  ;;  %v202_v55 = vld [vmem:[%s2026_s0 + $0x1d0] sm:$0xff]  ;;  %v171_v56 = vld [vmem:[%s2026_s0 + $0xd8] sm:$0xff] }
  0x1d   :  { %72 = vst.msk [vmem:[#allocation2 + $0x1c0] sm:$0xff] %vm15_vm1, %v1286_v3  ;;  %73 = vst.msk [vmem:[#allocation2 + $0x1c8] sm:$0xff] %vm15_vm1, %v1286_v3  ;;  %1206 = vmatmul.mubr.msk.f32.gmra.mrb[12].mxu0 %vm209_vm2, %v157_v28  ;;  %1254 = vmatmul.mubr.msk.f32.gmra.mrb[12].mxu1 %vm209_vm2, %v189_v29  ;;  %v203_v57 = vld [vmem:[%s2026_s0 + $0x1d8] sm:$0xff]  ;;  %v172_v58 = vld [vmem:[%s2026_s0 + $0xe0] sm:$0xff] }
  0x1e   :  { %74 = vst.msk [vmem:[#allocation2 + $0x1d0] sm:$0xff] %vm15_vm1, %v1286_v3  ;;  %75 = vst.msk [vmem:[#allocation2 + $0x1d8] sm:$0xff] %vm15_vm1, %v1286_v3  ;;  %1208 = vmatprep.mubr.msk.f32.mxu0 %vm209_vm2, %v158_v30  ;;  %1256 = vmatprep.mubr.msk.f32.mxu1 %vm209_vm2, %v190_v31  ;;  %v204_v59 = vld [vmem:[%s2026_s0 + $0x1e0] sm:$0xff]  ;;  %v173_v60 = vld [vmem:[%s2026_s0 + $0xe8] sm:$0xff] }
  0x1f   :  { %76 = vst.msk [vmem:[#allocation2 + $0x1e0] sm:$0xff] %vm15_vm1, %v1286_v3  ;;  %77 = vst.msk [vmem:[#allocation2 + $0x1e8] sm:$0xff] %vm15_vm1, %v1286_v3  ;;  %v205_v61 = vld [vmem:[%s2026_s0 + $0x1e8] sm:$0xff]  ;;  %v174_v62 = vld [vmem:[%s2026_s0 + $0xf0] sm:$0xff] }
  0x20   :  { %78 = vst.msk [vmem:[#allocation2 + $0x1f0] sm:$0xff] %vm15_vm1, %v1286_v3  ;;  %79 = vst.msk [vmem:[#allocation2 + $0x1f8] sm:$0xff] %vm15_vm1, %v1286_v3  ;;  %v206_v63 = vld [vmem:[%s2026_s0 + $0x1f0] sm:$0xff]  ;;  %v175_v0 = vld [vmem:[%s2026_s0 + $0xf8] sm:$0xff] }
  0x21   :  { %1209 = vmatmul.mubr.msk.f32.gmra.mrb[14].mxu0 %vm209_vm2, %v159_v32  ;;  %1257 = vmatmul.mubr.msk.f32.gmra.mrb[14].mxu1 %vm209_vm2, %v191_v33  ;;  %v207_v1 = vld [vmem:[%s2026_s0 + $0x1f8] sm:$0xff]  ;;  %v81_v2 = vld [vmem:[#allocation2 + $0x8] sm:$0xff]  ;;  %v80_v4 = vld [vmem:[#allocation2] sm:$0xff] }
  0x22   :  { %1211 = vmatprep.mubr.msk.f32.mxu0 %vm209_vm2, %v160_v34  ;;  %1259 = vmatprep.mubr.msk.f32.mxu1 %vm209_vm2, %v192_v35  ;;  %v113_v3 = vld [vmem:[#allocation2 + $0x108] sm:$0xff]  ;;  %v112_v5 = vld [vmem:[#allocation2 + $0x100] sm:$0xff]  ;;  %v83_v14 = vld [vmem:[#allocation2 + $0x18] sm:$0xff] }
  0x23   :  { %v115_v15 = vld [vmem:[#allocation2 + $0x118] sm:$0xff]  ;;  %v82_v16 = vld [vmem:[#allocation2 + $0x10] sm:$0xff]  ;;  %v85_v26 = vld [vmem:[#allocation2 + $0x28] sm:$0xff] }
  0x24   :  { %v114_v17 = vld [vmem:[#allocation2 + $0x110] sm:$0xff]  ;;  %v117_v27 = vld [vmem:[#allocation2 + $0x128] sm:$0xff]  ;;  %v84_v28 = vld [vmem:[#allocation2 + $0x20] sm:$0xff] }
  0x25   :  { %1212 = vmatmul.mubr.msk.f32.gmra.mrb[16].mxu0 %vm209_vm2, %v161_v36  ;;  %1260 = vmatmul.mubr.msk.f32.gmra.mrb[16].mxu1 %vm209_vm2, %v193_v37  ;;  %v116_v29 = vld [vmem:[#allocation2 + $0x120] sm:$0xff]  ;;  %v87_v36 = vld [vmem:[#allocation2 + $0x38] sm:$0xff] }
  0x26   :  { %1214 = vmatprep.mubr.msk.f32.mxu0 %vm209_vm2, %v162_v38  ;;  %1262 = vmatprep.mubr.msk.f32.mxu1 %vm209_vm2, %v194_v39  ;;  %v119_v37 = vld [vmem:[#allocation2 + $0x138] sm:$0xff] }
  0x29   :  { %1215 = vmatmul.mubr.msk.f32.gmra.mrb[18].mxu0 %vm209_vm2, %v163_v40  ;;  %1263 = vmatmul.mubr.msk.f32.gmra.mrb[18].mxu1 %vm209_vm2, %v195_v41 }
  0x2a   :  { %1217 = vmatprep.mubr.msk.f32.mxu0 %vm209_vm2, %v164_v42  ;;  %1265 = vmatprep.mubr.msk.f32.mxu1 %vm209_vm2, %v196_v43  ;;  %v86_v42 = vld [vmem:[#allocation2 + $0x30] sm:$0xff] }
  0x2d   :  { %1218 = vmatmul.mubr.msk.f32.gmra.mrb[20].mxu0 %vm209_vm2, %v165_v44  ;;  %1266 = vmatmul.mubr.msk.f32.gmra.mrb[20].mxu1 %vm209_vm2, %v197_v45  ;;  %v118_v45 = vld [vmem:[#allocation2 + $0x130] sm:$0xff] }
  0x2e   :  { %1220 = vmatprep.mubr.msk.f32.mxu0 %vm209_vm2, %v166_v46  ;;  %1268 = vmatprep.mubr.msk.f32.mxu1 %vm209_vm2, %v198_v47 }
  0x31   :  { %1221 = vmatmul.mubr.msk.f32.gmra.mrb[22].mxu0 %vm209_vm2, %v167_v48  ;;  %1269 = vmatmul.mubr.msk.f32.gmra.mrb[22].mxu1 %vm209_vm2, %v199_v49 }
  0x32   :  { %1223 = vmatprep.mubr.msk.f32.mxu0 %vm209_vm2, %v168_v50  ;;  %1271 = vmatprep.mubr.msk.f32.mxu1 %vm209_vm2, %v200_v51 }
  0x35   :  { %1224 = vmatmul.mubr.msk.f32.gmra.mrb[24].mxu0 %vm209_vm2, %v169_v52  ;;  %1272 = vmatmul.mubr.msk.f32.gmra.mrb[24].mxu1 %vm209_vm2, %v201_v53  ;;  %v89_v52 = vld [vmem:[#allocation2 + $0x48] sm:$0xff] }
  0x36   :  { %1226 = vmatprep.mubr.msk.f32.mxu0 %vm209_vm2, %v170_v54  ;;  %1274 = vmatprep.mubr.msk.f32.mxu1 %vm209_vm2, %v202_v55  ;;  %v121_v53 = vld [vmem:[#allocation2 + $0x148] sm:$0xff] }
  0x39   :  { %1227 = vmatmul.mubr.msk.f32.gmra.mrb[26].mxu0 %vm209_vm2, %v171_v56  ;;  %1275 = vmatmul.mubr.msk.f32.gmra.mrb[26].mxu1 %vm209_vm2, %v203_v57 }
  0x3a   :  { %1229 = vmatprep.mubr.msk.f32.mxu0 %vm209_vm2, %v172_v58  ;;  %1277 = vmatprep.mubr.msk.f32.mxu1 %vm209_vm2, %v204_v59  ;;  %v88_v58 = vld [vmem:[#allocation2 + $0x40] sm:$0xff] }
  0x3d   :  { %1230 = vmatmul.mubr.msk.f32.gmra.mrb[28].mxu0 %vm209_vm2, %v173_v60  ;;  %1278 = vmatmul.mubr.msk.f32.gmra.mrb[28].mxu1 %vm209_vm2, %v205_v61  ;;  %v120_v61 = vld [vmem:[#allocation2 + $0x140] sm:$0xff] }
  0x3e   :  { %1232 = vmatprep.mubr.msk.f32.mxu0 %vm209_vm2, %v174_v62  ;;  %1280 = vmatprep.mubr.msk.f32.mxu1 %vm209_vm2, %v206_v63 }
  0x41   :  { %1233 = vmatmul.mubr.msk.f32.gmra.mrb[30].mxu0 %vm209_vm2, %v175_v0  ;;  %1281 = vmatmul.mubr.msk.f32.gmra.mrb[30].mxu1 %vm209_vm2, %v207_v1 }
  0xd8   :  { %v1189_v6 = vpop.f32.mrb[0].mxu0  ;;  %v1237_v7 = vpop.f32.mrb[0].mxu1 }
  0xd9   :  { %v792_v8 = vadd.f32 %v1189_v6, %v81_v2  ;;  %v824_v9 = vadd.f32 %v1237_v7, %v113_v3  ;;  %v472_v10 = vpop.f32.mrb[1].mxu0  ;;  %v632_v11 = vpop.f32.mrb[1].mxu1 }
  0xda   :  { %v791_v12 = vadd.f32 %v472_v10, %v80_v4  ;;  %v823_v13 = vadd.f32 %v632_v11, %v112_v5  ;;  %v91_v4 = vld [vmem:[#allocation2 + $0x58] sm:$0xff]  ;;  %v90_v10 = vld [vmem:[#allocation2 + $0x50] sm:$0xff] }
  0xdb   :  { %857 = vst.msk [vmem:[#allocation2 + $0x8] sm:$0xff] %vm15_vm1, %v792_v8  ;;  %889 = vst.msk [vmem:[#allocation2 + $0x108] sm:$0xff] %vm15_vm1, %v824_v9  ;;  %v123_v5 = vld [vmem:[#allocation2 + $0x158] sm:$0xff] }
  0xdc   :  { %856 = vst.msk [vmem:[#allocation2] sm:$0xff] %vm15_vm1, %v791_v12  ;;  %888 = vst.msk [vmem:[#allocation2 + $0x100] sm:$0xff] %vm15_vm1, %v823_v13  ;;  %v1192_v18 = vpop.f32.mrb[2].mxu0  ;;  %v1240_v19 = vpop.f32.mrb[2].mxu1  ;;  %v122_v13 = vld [vmem:[#allocation2 + $0x150] sm:$0xff] }
  0xdd   :  { %v794_v20 = vadd.f32 %v1192_v18, %v83_v14  ;;  %v826_v21 = vadd.f32 %v1240_v19, %v115_v15  ;;  %v482_v22 = vpop.f32.mrb[3].mxu0  ;;  %v642_v23 = vpop.f32.mrb[3].mxu1 }
  0xde   :  { %v793_v24 = vadd.f32 %v482_v22, %v82_v16  ;;  %v825_v25 = vadd.f32 %v642_v23, %v114_v17 }
  0xdf   :  { %859 = vst.msk [vmem:[#allocation2 + $0x18] sm:$0xff] %vm15_vm1, %v794_v20  ;;  %891 = vst.msk [vmem:[#allocation2 + $0x118] sm:$0xff] %vm15_vm1, %v826_v21  ;;  %v93_v20 = vld [vmem:[#allocation2 + $0x68] sm:$0xff] }
  0xe0   :  { %858 = vst.msk [vmem:[#allocation2 + $0x10] sm:$0xff] %vm15_vm1, %v793_v24  ;;  %890 = vst.msk [vmem:[#allocation2 + $0x110] sm:$0xff] %vm15_vm1, %v825_v25  ;;  %v1195_v30 = vpop.f32.mrb[4].mxu0  ;;  %v1243_v31 = vpop.f32.mrb[4].mxu1  ;;  %v125_v21 = vld [vmem:[#allocation2 + $0x168] sm:$0xff] }
  0xe1   :  { %v796_v32 = vadd.f32 %v1195_v30, %v85_v26  ;;  %v828_v33 = vadd.f32 %v1243_v31, %v117_v27  ;;  %v492_v34 = vpop.f32.mrb[5].mxu0  ;;  %v652_v35 = vpop.f32.mrb[5].mxu1  ;;  %v92_v26 = vld [vmem:[#allocation2 + $0x60] sm:$0xff] }
  0xe2   :  { %v924_v38 = vld [vmem:[#allocation2 + $0x8] sm:$0xff]  ;;  %v795_v40 = vadd.f32 %v492_v34, %v84_v28  ;;  %v827_v41 = vadd.f32 %v652_v35, %v116_v29  ;;  %v124_v29 = vld [vmem:[#allocation2 + $0x160] sm:$0xff] }
  0xe3   :  { %v956_v39 = vld [vmem:[#allocation2 + $0x108] sm:$0xff]  ;;  %988 = vst.msk [vmem:[%s2027_s2 + $0x8] sm:$0xff] %vm15_vm1, %v924_v38  ;;  %v923_v43 = vld [vmem:[#allocation2] sm:$0xff]  ;;  %861 = vst.msk [vmem:[#allocation2 + $0x28] sm:$0xff] %vm15_vm1, %v796_v32 }
  0xe4   :  { %1020 = vst.msk [vmem:[%s2027_s2 + $0x108] sm:$0xff] %vm15_vm1, %v956_v39  ;;  %v955_v44 = vld [vmem:[#allocation2 + $0x100] sm:$0xff]  ;;  %893 = vst.msk [vmem:[#allocation2 + $0x128] sm:$0xff] %vm15_vm1, %v828_v33  ;;  %v1198_v46 = vpop.f32.mrb[6].mxu0  ;;  %v1246_v47 = vpop.f32.mrb[6].mxu1 }
  0xe5   :  { %987 = vst.msk [vmem:[%s2027_s2] sm:$0xff] %vm15_vm1, %v923_v43  ;;  %1019 = vst.msk [vmem:[%s2027_s2 + $0x100] sm:$0xff] %vm15_vm1, %v955_v44  ;;  %v798_v48 = vadd.f32 %v1198_v46, %v87_v36  ;;  %v830_v49 = vadd.f32 %v1246_v47, %v119_v37  ;;  %v502_v50 = vpop.f32.mrb[7].mxu0  ;;  %v662_v51 = vpop.f32.mrb[7].mxu1  ;;  %v95_v36 = vld [vmem:[#allocation2 + $0x78] sm:$0xff] }
  0xe6   :  { %860 = vst.msk [vmem:[#allocation2 + $0x20] sm:$0xff] %vm15_vm1, %v795_v40  ;;  %892 = vst.msk [vmem:[#allocation2 + $0x120] sm:$0xff] %vm15_vm1, %v827_v41  ;;  %v926_v54 = vld [vmem:[#allocation2 + $0x18] sm:$0xff]  ;;  %v797_v56 = vadd.f32 %v502_v50, %v86_v42  ;;  %v829_v57 = vadd.f32 %v662_v51, %v118_v45  ;;  %v94_v42 = vld [vmem:[#allocation2 + $0x70] sm:$0xff] }
  0xe7   :  { %v958_v55 = vld [vmem:[#allocation2 + $0x118] sm:$0xff]  ;;  %990 = vst.msk [vmem:[%s2027_s2 + $0x18] sm:$0xff] %vm15_vm1, %v926_v54  ;;  %v925_v59 = vld [vmem:[#allocation2 + $0x10] sm:$0xff]  ;;  %863 = vst.msk [vmem:[#allocation2 + $0x38] sm:$0xff] %vm15_vm1, %v798_v48 }
  0xe8   :  { %1022 = vst.msk [vmem:[%s2027_s2 + $0x118] sm:$0xff] %vm15_vm1, %v958_v55  ;;  %v957_v60 = vld [vmem:[#allocation2 + $0x110] sm:$0xff]  ;;  %895 = vst.msk [vmem:[#allocation2 + $0x138] sm:$0xff] %vm15_vm1, %v830_v49  ;;  %v1201_v62 = vpop.f32.mrb[8].mxu0  ;;  %v1249_v63 = vpop.f32.mrb[8].mxu1  ;;  %v127_v37 = vld [vmem:[#allocation2 + $0x178] sm:$0xff] }
  0xe9   :  { %989 = vst.msk [vmem:[%s2027_s2 + $0x10] sm:$0xff] %vm15_vm1, %v925_v59  ;;  %1021 = vst.msk [vmem:[%s2027_s2 + $0x110] sm:$0xff] %vm15_vm1, %v957_v60  ;;  %v800_v0 = vadd.f32 %v1201_v62, %v89_v52  ;;  %v832_v1 = vadd.f32 %v1249_v63, %v121_v53  ;;  %v512_v2 = vpop.f32.mrb[9].mxu0  ;;  %v672_v3 = vpop.f32.mrb[9].mxu1  ;;  %v126_v45 = vld [vmem:[#allocation2 + $0x170] sm:$0xff]  ;;  %v97_v52 = vld [vmem:[#allocation2 + $0x88] sm:$0xff] }
  0xea   :  { %862 = vst.msk [vmem:[#allocation2 + $0x30] sm:$0xff] %vm15_vm1, %v797_v56  ;;  %894 = vst.msk [vmem:[#allocation2 + $0x130] sm:$0xff] %vm15_vm1, %v829_v57  ;;  %v928_v6 = vld [vmem:[#allocation2 + $0x28] sm:$0xff]  ;;  %v799_v8 = vadd.f32 %v512_v2, %v88_v58  ;;  %v831_v9 = vadd.f32 %v672_v3, %v120_v61  ;;  %v96_v58 = vld [vmem:[#allocation2 + $0x80] sm:$0xff] }
  0xeb   :  { %v960_v7 = vld [vmem:[#allocation2 + $0x128] sm:$0xff]  ;;  %992 = vst.msk [vmem:[%s2027_s2 + $0x28] sm:$0xff] %vm15_vm1, %v928_v6  ;;  %865 = vst.msk [vmem:[#allocation2 + $0x48] sm:$0xff] %vm15_vm1, %v800_v0  ;;  %v128_v61 = vld [vmem:[#allocation2 + $0x180] sm:$0xff] }
  0xec   :  { %1024 = vst.msk [vmem:[%s2027_s2 + $0x128] sm:$0xff] %vm15_vm1, %v960_v7  ;;  %897 = vst.msk [vmem:[#allocation2 + $0x148] sm:$0xff] %vm15_vm1, %v832_v1  ;;  %v1204_v14 = vpop.f32.mrb[10].mxu0  ;;  %v1252_v15 = vpop.f32.mrb[10].mxu1  ;;  %v129_v53 = vld [vmem:[#allocation2 + $0x188] sm:$0xff] }
  0xed   :  { %v927_v11 = vld [vmem:[#allocation2 + $0x20] sm:$0xff]  ;;  %864 = vst.msk [vmem:[#allocation2 + $0x40] sm:$0xff] %vm15_vm1, %v799_v8  ;;  %896 = vst.msk [vmem:[#allocation2 + $0x140] sm:$0xff] %vm15_vm1, %v831_v9  ;;  %v802_v16 = vadd.f32 %v1204_v14, %v91_v4  ;;  %v834_v17 = vadd.f32 %v1252_v15, %v123_v5  ;;  %v522_v18 = vpop.f32.mrb[11].mxu0  ;;  %v682_v19 = vpop.f32.mrb[11].mxu1  ;;  %v99_v4 = vld [vmem:[#allocation2 + $0x98] sm:$0xff] }
  0xee   :  { %v959_v12 = vld [vmem:[#allocation2 + $0x120] sm:$0xff]  ;;  %991 = vst.msk [vmem:[%s2027_s2 + $0x20] sm:$0xff] %vm15_vm1, %v927_v11  ;;  %v930_v22 = vld [vmem:[#allocation2 + $0x38] sm:$0xff]  ;;  %v801_v24 = vadd.f32 %v522_v18, %v90_v10  ;;  %v833_v25 = vadd.f32 %v682_v19, %v122_v13  ;;  %v98_v10 = vld [vmem:[#allocation2 + $0x90] sm:$0xff] }
  0xef   :  { %1023 = vst.msk [vmem:[%s2027_s2 + $0x120] sm:$0xff] %vm15_vm1, %v959_v12  ;;  %v962_v23 = vld [vmem:[#allocation2 + $0x138] sm:$0xff]  ;;  %994 = vst.msk [vmem:[%s2027_s2 + $0x38] sm:$0xff] %vm15_vm1, %v930_v22  ;;  %v130_v13 = vld [vmem:[#allocation2 + $0x190] sm:$0xff] }
  0xf0   :  { %1026 = vst.msk [vmem:[%s2027_s2 + $0x138] sm:$0xff] %vm15_vm1, %v962_v23  ;;  %867 = vst.msk [vmem:[#allocation2 + $0x58] sm:$0xff] %vm15_vm1, %v802_v16  ;;  %v1207_v30 = vpop.f32.mrb[12].mxu0  ;;  %v1255_v31 = vpop.f32.mrb[12].mxu1  ;;  %v131_v5 = vld [vmem:[#allocation2 + $0x198] sm:$0xff] }
  0xf1   :  { %v929_v27 = vld [vmem:[#allocation2 + $0x30] sm:$0xff]  ;;  %899 = vst.msk [vmem:[#allocation2 + $0x158] sm:$0xff] %vm15_vm1, %v834_v17  ;;  %866 = vst.msk [vmem:[#allocation2 + $0x50] sm:$0xff] %vm15_vm1, %v801_v24  ;;  %v804_v32 = vadd.f32 %v1207_v30, %v93_v20  ;;  %v836_v33 = vadd.f32 %v1255_v31, %v125_v21  ;;  %v532_v34 = vpop.f32.mrb[13].mxu0  ;;  %v692_v35 = vpop.f32.mrb[13].mxu1  ;;  %v101_v20 = vld [vmem:[#allocation2 + $0xa8] sm:$0xff] }
  0xf2   :  { %v961_v28 = vld [vmem:[#allocation2 + $0x130] sm:$0xff]  ;;  %993 = vst.msk [vmem:[%s2027_s2 + $0x30] sm:$0xff] %vm15_vm1, %v929_v27  ;;  %898 = vst.msk [vmem:[#allocation2 + $0x150] sm:$0xff] %vm15_vm1, %v833_v25  ;;  %v932_v38 = vld [vmem:[#allocation2 + $0x48] sm:$0xff]  ;;  %v803_v40 = vadd.f32 %v532_v34, %v92_v26  ;;  %v835_v41 = vadd.f32 %v692_v35, %v124_v29 }
  0xf3   :  { %1025 = vst.msk [vmem:[%s2027_s2 + $0x130] sm:$0xff] %vm15_vm1, %v961_v28  ;;  %v964_v39 = vld [vmem:[#allocation2 + $0x148] sm:$0xff]  ;;  %996 = vst.msk [vmem:[%s2027_s2 + $0x48] sm:$0xff] %vm15_vm1, %v932_v38  ;;  %v100_v26 = vld [vmem:[#allocation2 + $0xa0] sm:$0xff] }
  0xf4   :  { %1028 = vst.msk [vmem:[%s2027_s2 + $0x148] sm:$0xff] %vm15_vm1, %v964_v39  ;;  %v931_v43 = vld [vmem:[#allocation2 + $0x40] sm:$0xff]  ;;  %869 = vst.msk [vmem:[#allocation2 + $0x68] sm:$0xff] %vm15_vm1, %v804_v32  ;;  %v1210_v46 = vpop.f32.mrb[14].mxu0  ;;  %v1258_v47 = vpop.f32.mrb[14].mxu1  ;;  %v133_v21 = vld [vmem:[#allocation2 + $0x1a8] sm:$0xff] }
  0xf5   :  { %v963_v44 = vld [vmem:[#allocation2 + $0x140] sm:$0xff]  ;;  %901 = vst.msk [vmem:[#allocation2 + $0x168] sm:$0xff] %vm15_vm1, %v836_v33  ;;  %995 = vst.msk [vmem:[%s2027_s2 + $0x40] sm:$0xff] %vm15_vm1, %v931_v43  ;;  %v806_v48 = vadd.f32 %v1210_v46, %v95_v36  ;;  %v838_v49 = vadd.f32 %v1258_v47, %v127_v37  ;;  %v542_v50 = vpop.f32.mrb[15].mxu0  ;;  %v702_v51 = vpop.f32.mrb[15].mxu1  ;;  %v103_v36 = vld [vmem:[#allocation2 + $0xb8] sm:$0xff] }
  0xf6   :  { %1027 = vst.msk [vmem:[%s2027_s2 + $0x140] sm:$0xff] %vm15_vm1, %v963_v44  ;;  %868 = vst.msk [vmem:[#allocation2 + $0x60] sm:$0xff] %vm15_vm1, %v803_v40  ;;  %v805_v56 = vadd.f32 %v542_v50, %v94_v42  ;;  %v837_v57 = vadd.f32 %v702_v51, %v126_v45  ;;  %v132_v29 = vld [vmem:[#allocation2 + $0x1a0] sm:$0xff]  ;;  %v135_v37 = vld [vmem:[#allocation2 + $0x1b8] sm:$0xff] }
  0xf7   :  { %900 = vst.msk [vmem:[#allocation2 + $0x160] sm:$0xff] %vm15_vm1, %v835_v41  ;;  %v934_v54 = vld [vmem:[#allocation2 + $0x58] sm:$0xff]  ;;  %871 = vst.msk [vmem:[#allocation2 + $0x78] sm:$0xff] %vm15_vm1, %v806_v48  ;;  %v102_v42 = vld [vmem:[#allocation2 + $0xb0] sm:$0xff] }
  0xf8   :  { %v966_v55 = vld [vmem:[#allocation2 + $0x158] sm:$0xff]  ;;  %998 = vst.msk [vmem:[%s2027_s2 + $0x58] sm:$0xff] %vm15_vm1, %v934_v54  ;;  %v933_v59 = vld [vmem:[#allocation2 + $0x50] sm:$0xff]  ;;  %903 = vst.msk [vmem:[#allocation2 + $0x178] sm:$0xff] %vm15_vm1, %v838_v49  ;;  %v1213_v62 = vpop.f32.mrb[16].mxu0  ;;  %v1261_v63 = vpop.f32.mrb[16].mxu1 }
  0xf9   :  { %1030 = vst.msk [vmem:[%s2027_s2 + $0x158] sm:$0xff] %vm15_vm1, %v966_v55  ;;  %v965_v60 = vld [vmem:[#allocation2 + $0x150] sm:$0xff]  ;;  %997 = vst.msk [vmem:[%s2027_s2 + $0x50] sm:$0xff] %vm15_vm1, %v933_v59  ;;  %v808_v0 = vadd.f32 %v1213_v62, %v97_v52  ;;  %v840_v1 = vadd.f32 %v1261_v63, %v129_v53  ;;  %v552_v2 = vpop.f32.mrb[17].mxu0  ;;  %v712_v3 = vpop.f32.mrb[17].mxu1  ;;  %v105_v52 = vld [vmem:[#allocation2 + $0xc8] sm:$0xff] }
  0xfa   :  { %1029 = vst.msk [vmem:[%s2027_s2 + $0x150] sm:$0xff] %vm15_vm1, %v965_v60  ;;  %870 = vst.msk [vmem:[#allocation2 + $0x70] sm:$0xff] %vm15_vm1, %v805_v56  ;;  %v807_v8 = vadd.f32 %v552_v2, %v96_v58  ;;  %v839_v9 = vadd.f32 %v712_v3, %v128_v61  ;;  %v134_v45 = vld [vmem:[#allocation2 + $0x1b0] sm:$0xff]  ;;  %v137_v53 = vld [vmem:[#allocation2 + $0x1c8] sm:$0xff] }
  0xfb   :  { %902 = vst.msk [vmem:[#allocation2 + $0x170] sm:$0xff] %vm15_vm1, %v837_v57  ;;  %v936_v6 = vld [vmem:[#allocation2 + $0x68] sm:$0xff]  ;;  %873 = vst.msk [vmem:[#allocation2 + $0x88] sm:$0xff] %vm15_vm1, %v808_v0  ;;  %v104_v58 = vld [vmem:[#allocation2 + $0xc0] sm:$0xff] }
  0xfc   :  { %v968_v7 = vld [vmem:[#allocation2 + $0x168] sm:$0xff]  ;;  %1000 = vst.msk [vmem:[%s2027_s2 + $0x68] sm:$0xff] %vm15_vm1, %v936_v6  ;;  %905 = vst.msk [vmem:[#allocation2 + $0x188] sm:$0xff] %vm15_vm1, %v840_v1  ;;  %v1216_v14 = vpop.f32.mrb[18].mxu0  ;;  %v1264_v15 = vpop.f32.mrb[18].mxu1  ;;  %v136_v61 = vld [vmem:[#allocation2 + $0x1c0] sm:$0xff] }
  0xfd   :  { %1032 = vst.msk [vmem:[%s2027_s2 + $0x168] sm:$0xff] %vm15_vm1, %v968_v7  ;;  %v935_v11 = vld [vmem:[#allocation2 + $0x60] sm:$0xff]  ;;  %872 = vst.msk [vmem:[#allocation2 + $0x80] sm:$0xff] %vm15_vm1, %v807_v8  ;;  %v810_v16 = vadd.f32 %v1216_v14, %v99_v4  ;;  %v842_v17 = vadd.f32 %v1264_v15, %v131_v5  ;;  %v562_v18 = vpop.f32.mrb[19].mxu0  ;;  %v722_v19 = vpop.f32.mrb[19].mxu1  ;;  %v107_v4 = vld [vmem:[#allocation2 + $0xd8] sm:$0xff] }
  0xfe   :  { %v967_v12 = vld [vmem:[#allocation2 + $0x160] sm:$0xff]  ;;  %999 = vst.msk [vmem:[%s2027_s2 + $0x60] sm:$0xff] %vm15_vm1, %v935_v11  ;;  %904 = vst.msk [vmem:[#allocation2 + $0x180] sm:$0xff] %vm15_vm1, %v839_v9  ;;  %v938_v22 = vld [vmem:[#allocation2 + $0x78] sm:$0xff]  ;;  %v809_v24 = vadd.f32 %v562_v18, %v98_v10  ;;  %v841_v25 = vadd.f32 %v722_v19, %v130_v13 }
  0xff   :  { %1031 = vst.msk [vmem:[%s2027_s2 + $0x160] sm:$0xff] %vm15_vm1, %v967_v12  ;;  %v970_v23 = vld [vmem:[#allocation2 + $0x178] sm:$0xff]  ;;  %1002 = vst.msk [vmem:[%s2027_s2 + $0x78] sm:$0xff] %vm15_vm1, %v938_v22  ;;  %v106_v10 = vld [vmem:[#allocation2 + $0xd0] sm:$0xff] }
 0x100   :  { %1034 = vst.msk [vmem:[%s2027_s2 + $0x178] sm:$0xff] %vm15_vm1, %v970_v23  ;;  %875 = vst.msk [vmem:[#allocation2 + $0x98] sm:$0xff] %vm15_vm1, %v810_v16  ;;  %v1219_v30 = vpop.f32.mrb[20].mxu0  ;;  %v1267_v31 = vpop.f32.mrb[20].mxu1  ;;  %v139_v5 = vld [vmem:[#allocation2 + $0x1d8] sm:$0xff]  ;;  %v138_v13 = vld [vmem:[#allocation2 + $0x1d0] sm:$0xff] }
 0x101   :  { %v937_v27 = vld [vmem:[#allocation2 + $0x70] sm:$0xff]  ;;  %907 = vst.msk [vmem:[#allocation2 + $0x198] sm:$0xff] %vm15_vm1, %v842_v17  ;;  %874 = vst.msk [vmem:[#allocation2 + $0x90] sm:$0xff] %vm15_vm1, %v809_v24  ;;  %v812_v32 = vadd.f32 %v1219_v30, %v101_v20  ;;  %v844_v33 = vadd.f32 %v1267_v31, %v133_v21  ;;  %v572_v34 = vpop.f32.mrb[21].mxu0  ;;  %v732_v35 = vpop.f32.mrb[21].mxu1  ;;  %v109_v20 = vld [vmem:[#allocation2 + $0xe8] sm:$0xff] }
 0x102   :  { %v969_v28 = vld [vmem:[#allocation2 + $0x170] sm:$0xff]  ;;  %1001 = vst.msk [vmem:[%s2027_s2 + $0x70] sm:$0xff] %vm15_vm1, %v937_v27  ;;  %906 = vst.msk [vmem:[#allocation2 + $0x190] sm:$0xff] %vm15_vm1, %v841_v25  ;;  %v940_v38 = vld [vmem:[#allocation2 + $0x88] sm:$0xff]  ;;  %v811_v40 = vadd.f32 %v572_v34, %v100_v26  ;;  %v843_v41 = vadd.f32 %v732_v35, %v132_v29 }
 0x103   :  { %1033 = vst.msk [vmem:[%s2027_s2 + $0x170] sm:$0xff] %vm15_vm1, %v969_v28  ;;  %v972_v39 = vld [vmem:[#allocation2 + $0x188] sm:$0xff]  ;;  %1004 = vst.msk [vmem:[%s2027_s2 + $0x88] sm:$0xff] %vm15_vm1, %v940_v38  ;;  %v108_v26 = vld [vmem:[#allocation2 + $0xe0] sm:$0xff] }
 0x104   :  { %1036 = vst.msk [vmem:[%s2027_s2 + $0x188] sm:$0xff] %vm15_vm1, %v972_v39  ;;  %v939_v43 = vld [vmem:[#allocation2 + $0x80] sm:$0xff]  ;;  %877 = vst.msk [vmem:[#allocation2 + $0xa8] sm:$0xff] %vm15_vm1, %v812_v32  ;;  %v1222_v46 = vpop.f32.mrb[22].mxu0  ;;  %v1270_v47 = vpop.f32.mrb[22].mxu1  ;;  %v141_v21 = vld [vmem:[#allocation2 + $0x1e8] sm:$0xff] }
 0x105   :  { %v971_v44 = vld [vmem:[#allocation2 + $0x180] sm:$0xff]  ;;  %909 = vst.msk [vmem:[#allocation2 + $0x1a8] sm:$0xff] %vm15_vm1, %v844_v33  ;;  %1003 = vst.msk [vmem:[%s2027_s2 + $0x80] sm:$0xff] %vm15_vm1, %v939_v43  ;;  %v814_v48 = vadd.f32 %v1222_v46, %v103_v36  ;;  %v846_v49 = vadd.f32 %v1270_v47, %v135_v37  ;;  %v582_v50 = vpop.f32.mrb[23].mxu0  ;;  %v742_v51 = vpop.f32.mrb[23].mxu1  ;;  %v111_v36 = vld [vmem:[#allocation2 + $0xf8] sm:$0xff] }
 0x106   :  { %1035 = vst.msk [vmem:[%s2027_s2 + $0x180] sm:$0xff] %vm15_vm1, %v971_v44  ;;  %876 = vst.msk [vmem:[#allocation2 + $0xa0] sm:$0xff] %vm15_vm1, %v811_v40  ;;  %v813_v56 = vadd.f32 %v582_v50, %v102_v42  ;;  %v845_v57 = vadd.f32 %v742_v51, %v134_v45  ;;  %v140_v29 = vld [vmem:[#allocation2 + $0x1e0] sm:$0xff]  ;;  %v143_v37 = vld [vmem:[#allocation2 + $0x1f8] sm:$0xff] }
 0x107   :  { %908 = vst.msk [vmem:[#allocation2 + $0x1a0] sm:$0xff] %vm15_vm1, %v843_v41  ;;  %v942_v54 = vld [vmem:[#allocation2 + $0x98] sm:$0xff]  ;;  %879 = vst.msk [vmem:[#allocation2 + $0xb8] sm:$0xff] %vm15_vm1, %v814_v48  ;;  %v110_v42 = vld [vmem:[#allocation2 + $0xf0] sm:$0xff] }
 0x108   :  { %v974_v55 = vld [vmem:[#allocation2 + $0x198] sm:$0xff]  ;;  %1006 = vst.msk [vmem:[%s2027_s2 + $0x98] sm:$0xff] %vm15_vm1, %v942_v54  ;;  %v941_v59 = vld [vmem:[#allocation2 + $0x90] sm:$0xff]  ;;  %911 = vst.msk [vmem:[#allocation2 + $0x1b8] sm:$0xff] %vm15_vm1, %v846_v49  ;;  %v1225_v62 = vpop.f32.mrb[24].mxu0  ;;  %v1273_v63 = vpop.f32.mrb[24].mxu1 }
 0x109   :  { %1038 = vst.msk [vmem:[%s2027_s2 + $0x198] sm:$0xff] %vm15_vm1, %v974_v55  ;;  %v973_v60 = vld [vmem:[#allocation2 + $0x190] sm:$0xff]  ;;  %1005 = vst.msk [vmem:[%s2027_s2 + $0x90] sm:$0xff] %vm15_vm1, %v941_v59  ;;  %v816_v0 = vadd.f32 %v1225_v62, %v105_v52  ;;  %v848_v1 = vadd.f32 %v1273_v63, %v137_v53  ;;  %v592_v2 = vpop.f32.mrb[25].mxu0  ;;  %v752_v3 = vpop.f32.mrb[25].mxu1 }
 0x10a   :  { %1037 = vst.msk [vmem:[%s2027_s2 + $0x190] sm:$0xff] %vm15_vm1, %v973_v60  ;;  %878 = vst.msk [vmem:[#allocation2 + $0xb0] sm:$0xff] %vm15_vm1, %v813_v56  ;;  %v815_v8 = vadd.f32 %v592_v2, %v104_v58  ;;  %v847_v9 = vadd.f32 %v752_v3, %v136_v61  ;;  %v142_v45 = vld [vmem:[#allocation2 + $0x1f0] sm:$0xff] }
 0x10b   :  { %910 = vst.msk [vmem:[#allocation2 + $0x1b0] sm:$0xff] %vm15_vm1, %v845_v57  ;;  %v944_v6 = vld [vmem:[#allocation2 + $0xa8] sm:$0xff]  ;;  %881 = vst.msk [vmem:[#allocation2 + $0xc8] sm:$0xff] %vm15_vm1, %v816_v0 }
 0x10c   :  { %v976_v7 = vld [vmem:[#allocation2 + $0x1a8] sm:$0xff]  ;;  %1008 = vst.msk [vmem:[%s2027_s2 + $0xa8] sm:$0xff] %vm15_vm1, %v944_v6  ;;  %913 = vst.msk [vmem:[#allocation2 + $0x1c8] sm:$0xff] %vm15_vm1, %v848_v1  ;;  %v1228_v14 = vpop.f32.mrb[26].mxu0  ;;  %v1276_v15 = vpop.f32.mrb[26].mxu1 }
 0x10d   :  { %1040 = vst.msk [vmem:[%s2027_s2 + $0x1a8] sm:$0xff] %vm15_vm1, %v976_v7  ;;  %v943_v11 = vld [vmem:[#allocation2 + $0xa0] sm:$0xff]  ;;  %880 = vst.msk [vmem:[#allocation2 + $0xc0] sm:$0xff] %vm15_vm1, %v815_v8  ;;  %v818_v16 = vadd.f32 %v1228_v14, %v107_v4  ;;  %v850_v17 = vadd.f32 %v1276_v15, %v139_v5  ;;  %v602_v18 = vpop.f32.mrb[27].mxu0  ;;  %v762_v19 = vpop.f32.mrb[27].mxu1 }
 0x10e   :  { %v975_v12 = vld [vmem:[#allocation2 + $0x1a0] sm:$0xff]  ;;  %1007 = vst.msk [vmem:[%s2027_s2 + $0xa0] sm:$0xff] %vm15_vm1, %v943_v11  ;;  %912 = vst.msk [vmem:[#allocation2 + $0x1c0] sm:$0xff] %vm15_vm1, %v847_v9  ;;  %v946_v22 = vld [vmem:[#allocation2 + $0xb8] sm:$0xff]  ;;  %v817_v24 = vadd.f32 %v602_v18, %v106_v10  ;;  %v849_v25 = vadd.f32 %v762_v19, %v138_v13 }
 0x10f   :  { %1039 = vst.msk [vmem:[%s2027_s2 + $0x1a0] sm:$0xff] %vm15_vm1, %v975_v12  ;;  %v978_v23 = vld [vmem:[#allocation2 + $0x1b8] sm:$0xff]  ;;  %1010 = vst.msk [vmem:[%s2027_s2 + $0xb8] sm:$0xff] %vm15_vm1, %v946_v22 }
 0x110   :  { %1042 = vst.msk [vmem:[%s2027_s2 + $0x1b8] sm:$0xff] %vm15_vm1, %v978_v23  ;;  %883 = vst.msk [vmem:[#allocation2 + $0xd8] sm:$0xff] %vm15_vm1, %v818_v16  ;;  %v1231_v30 = vpop.f32.mrb[28].mxu0  ;;  %v1279_v31 = vpop.f32.mrb[28].mxu1 }
 0x111   :  { %v945_v27 = vld [vmem:[#allocation2 + $0xb0] sm:$0xff]  ;;  %915 = vst.msk [vmem:[#allocation2 + $0x1d8] sm:$0xff] %vm15_vm1, %v850_v17  ;;  %882 = vst.msk [vmem:[#allocation2 + $0xd0] sm:$0xff] %vm15_vm1, %v817_v24  ;;  %v820_v32 = vadd.f32 %v1231_v30, %v109_v20  ;;  %v852_v33 = vadd.f32 %v1279_v31, %v141_v21  ;;  %v612_v34 = vpop.f32.mrb[29].mxu0  ;;  %v772_v35 = vpop.f32.mrb[29].mxu1 }
 0x112   :  { %v977_v28 = vld [vmem:[#allocation2 + $0x1b0] sm:$0xff]  ;;  %1009 = vst.msk [vmem:[%s2027_s2 + $0xb0] sm:$0xff] %vm15_vm1, %v945_v27  ;;  %914 = vst.msk [vmem:[#allocation2 + $0x1d0] sm:$0xff] %vm15_vm1, %v849_v25  ;;  %v948_v38 = vld [vmem:[#allocation2 + $0xc8] sm:$0xff]  ;;  %v819_v40 = vadd.f32 %v612_v34, %v108_v26  ;;  %v851_v41 = vadd.f32 %v772_v35, %v140_v29 }
 0x113   :  { %1041 = vst.msk [vmem:[%s2027_s2 + $0x1b0] sm:$0xff] %vm15_vm1, %v977_v28  ;;  %v980_v39 = vld [vmem:[#allocation2 + $0x1c8] sm:$0xff]  ;;  %1012 = vst.msk [vmem:[%s2027_s2 + $0xc8] sm:$0xff] %vm15_vm1, %v948_v38 }
 0x114   :  { %1044 = vst.msk [vmem:[%s2027_s2 + $0x1c8] sm:$0xff] %vm15_vm1, %v980_v39  ;;  %v947_v43 = vld [vmem:[#allocation2 + $0xc0] sm:$0xff]  ;;  %885 = vst.msk [vmem:[#allocation2 + $0xe8] sm:$0xff] %vm15_vm1, %v820_v32  ;;  %v1234_v46 = vpop.f32.mrb[30].mxu0  ;;  %v1282_v47 = vpop.f32.mrb[30].mxu1 }
 0x115   :  { %v979_v44 = vld [vmem:[#allocation2 + $0x1c0] sm:$0xff]  ;;  %917 = vst.msk [vmem:[#allocation2 + $0x1e8] sm:$0xff] %vm15_vm1, %v852_v33  ;;  %1011 = vst.msk [vmem:[%s2027_s2 + $0xc0] sm:$0xff] %vm15_vm1, %v947_v43  ;;  %v822_v48 = vadd.f32 %v1234_v46, %v111_v36  ;;  %v854_v49 = vadd.f32 %v1282_v47, %v143_v37  ;;  %v622_v50 = vpop.f32.mrb[31].mxu0  ;;  %v782_v51 = vpop.f32.mrb[31].mxu1 }
 0x116   :  { %1043 = vst.msk [vmem:[%s2027_s2 + $0x1c0] sm:$0xff] %vm15_vm1, %v979_v44  ;;  %884 = vst.msk [vmem:[#allocation2 + $0xe0] sm:$0xff] %vm15_vm1, %v819_v40  ;;  %v821_v54 = vadd.f32 %v622_v50, %v110_v42  ;;  %v853_v55 = vadd.f32 %v782_v51, %v142_v45 }
 0x117   :  { %916 = vst.msk [vmem:[#allocation2 + $0x1e0] sm:$0xff] %vm15_vm1, %v851_v41  ;;  %v950_v52 = vld [vmem:[#allocation2 + $0xd8] sm:$0xff]  ;;  %887 = vst.msk [vmem:[#allocation2 + $0xf8] sm:$0xff] %vm15_vm1, %v822_v48 }
 0x118   :  { %v982_v53 = vld [vmem:[#allocation2 + $0x1d8] sm:$0xff]  ;;  %1014 = vst.msk [vmem:[%s2027_s2 + $0xd8] sm:$0xff] %vm15_vm1, %v950_v52  ;;  %v949_v56 = vld [vmem:[#allocation2 + $0xd0] sm:$0xff]  ;;  %919 = vst.msk [vmem:[#allocation2 + $0x1f8] sm:$0xff] %vm15_vm1, %v854_v49 }
 0x119   :  { %1046 = vst.msk [vmem:[%s2027_s2 + $0x1d8] sm:$0xff] %vm15_vm1, %v982_v53  ;;  %v981_v57 = vld [vmem:[#allocation2 + $0x1d0] sm:$0xff]  ;;  %1013 = vst.msk [vmem:[%s2027_s2 + $0xd0] sm:$0xff] %vm15_vm1, %v949_v56 }
 0x11a   :  { %1045 = vst.msk [vmem:[%s2027_s2 + $0x1d0] sm:$0xff] %vm15_vm1, %v981_v57  ;;  %886 = vst.msk [vmem:[#allocation2 + $0xf0] sm:$0xff] %vm15_vm1, %v821_v54 }
 0x11b   :  { %918 = vst.msk [vmem:[#allocation2 + $0x1f0] sm:$0xff] %vm15_vm1, %v853_v55  ;;  %v952_v58 = vld [vmem:[#allocation2 + $0xe8] sm:$0xff] }
 0x11c   :  { %v984_v59 = vld [vmem:[#allocation2 + $0x1e8] sm:$0xff]  ;;  %1016 = vst.msk [vmem:[%s2027_s2 + $0xe8] sm:$0xff] %vm15_vm1, %v952_v58 }
 0x11d   :  { %1048 = vst.msk [vmem:[%s2027_s2 + $0x1e8] sm:$0xff] %vm15_vm1, %v984_v59  ;;  %v951_v60 = vld [vmem:[#allocation2 + $0xe0] sm:$0xff] }
 0x11e   :  { %v983_v61 = vld [vmem:[#allocation2 + $0x1e0] sm:$0xff]  ;;  %1015 = vst.msk [vmem:[%s2027_s2 + $0xe0] sm:$0xff] %vm15_vm1, %v951_v60  ;;  %v954_v62 = vld [vmem:[#allocation2 + $0xf8] sm:$0xff] }
 0x11f   :  { %1047 = vst.msk [vmem:[%s2027_s2 + $0x1e0] sm:$0xff] %vm15_vm1, %v983_v61  ;;  %v986_v63 = vld [vmem:[#allocation2 + $0x1f8] sm:$0xff]  ;;  %1018 = vst.msk [vmem:[%s2027_s2 + $0xf8] sm:$0xff] %vm15_vm1, %v954_v62 }
 0x120   :  { %1050 = vst.msk [vmem:[%s2027_s2 + $0x1f8] sm:$0xff] %vm15_vm1, %v986_v63 }
 0x121   :  { %v953_v0 = vld [vmem:[#allocation2 + $0xf0] sm:$0xff] }
 0x122   :  { %v985_v1 = vld [vmem:[#allocation2 + $0x1f0] sm:$0xff]  ;;  %1017 = vst.msk [vmem:[%s2027_s2 + $0xf0] sm:$0xff] %vm15_vm1, %v953_v0 }
 0x123   :  { %1049 = vst.msk [vmem:[%s2027_s2 + $0x1f0] sm:$0xff] %vm15_vm1, %v985_v1 }

</bundles_post_ra>
